<compile_context>
chip_gen: v6e
topology: v6e:2x2x1
jax: 0.10.0
libtpu: 0.0.40
codegen_flags: <defaults>
</compile_context>

<pallas_src>
import functools

import jax
import jax.numpy as jnp
from jax.experimental import pallas as pl
from jax.experimental.pallas import tpu as pltpu

CP_DIM = 56
EP_DIM = 5
OP_DIM = 15
IN_F = CP_DIM + EP_DIM + OP_DIM      # 76
HID = 64
OUT_F = OP_DIM                       # 15
N_LAYERS = 6                         # 5 hidden + 1 output

F_PAD = 128                          # lane-padded output width of every layer
TB = 8                               # batch rows per grid step (sublane-aligned)
NEG_SLOPE = 0.01
BN_EPS = 1e-5


def mlp_kernel(x_ref, w0_ref, wr_ref, b_ref, o_ref):
    """x_ref: (TB, IN_F) f32; w0_ref: (IN_F, F_PAD) bf16;
    wr_ref: (5, HID, F_PAD) bf16; b_ref: (6, 1, F_PAD) f32; o_ref: (TB, F_PAD) f32."""
    # Layer 0: (TB,76) @ (76,128) -> (TB,128); cols >= 64 are exactly 0 after bias/ReLU.
    x = x_ref[...].astype(jnp.bfloat16)
    z = jnp.dot(x, w0_ref[...], preferred_element_type=jnp.float32) + b_ref[0]
    h = jnp.where(z > 0, z, NEG_SLOPE * z)                      # LeakyReLU(0.01)

    # Layers 1..5: only the first 64 columns are real features -> K = 64 matmuls.
    for i in range(N_LAYERS - 1):                               # static unroll (5 matmuls)
        hin = h[:, :HID].astype(jnp.bfloat16)
        z = jnp.dot(hin, wr_ref[i], preferred_element_type=jnp.float32) + b_ref[i + 1]
        if i < N_LAYERS - 2:
            h = jnp.where(z > 0, z, NEG_SLOPE * z)
        else:
            h = z                                               # final Linear, no activation
    o_ref[...] = h


@jax.jit
def mlp_forward(x_pad, w0, wr, b):
    """x_pad: (B_pad, IN_F) f32 with B_pad % TB == 0. Returns (B_pad, F_PAD) f32."""
    b_pad = x_pad.shape[0]
    grid = (b_pad // TB,)
    return pl.pallas_call(
        mlp_kernel,
        out_shape=jax.ShapeDtypeStruct((b_pad, F_PAD), jnp.float32),
        grid=grid,
        in_specs=[
            pl.BlockSpec((TB, IN_F), lambda i: (i, 0)),            # activations: tiled over batch
            pl.BlockSpec((IN_F, F_PAD), lambda i: (0, 0)),         # weights: constant block ->
            pl.BlockSpec((N_LAYERS - 1, HID, F_PAD), lambda i: (0, 0, 0)),  # fetched once, resident
            pl.BlockSpec((N_LAYERS, 1, F_PAD), lambda i: (0, 0, 0)),
        ],
        out_specs=pl.BlockSpec((TB, F_PAD), lambda i: (i, 0)),
        compiler_params=pltpu.CompilerParams(
            dimension_semantics=("parallel",)),                    # shards batch across TCs on v7x
    )(x_pad, w0, wr, b)


def init_params(key, bn_stats=None):
    """Deterministic PyTorch-style init; returns BN-folded, bf16, tightly padded weights.

    bn_stats: optional list of 5 dicts {gamma, beta, mean, var} (arrays of shape (64,))
    for trained BatchNorm layers; defaults to eval-mode defaults (gamma=1, beta=0,
    mean=0, var=1).
    """
    dims = [(IN_F, HID)] + [(HID, HID)] * 4 + [(HID, OUT_F)]
    w0 = jnp.zeros((IN_F, F_PAD), jnp.float32)
    wr = jnp.zeros((N_LAYERS - 1, HID, F_PAD), jnp.float32)
    bias = jnp.zeros((N_LAYERS, 1, F_PAD), jnp.float32)

    for i, (fin, fout) in enumerate(dims):
        key, kw, kb = jax.random.split(key, 3)
        bound = 1.0 / jnp.sqrt(float(fin))
        w = jax.random.uniform(kw, (fin, fout), jnp.float32, -bound, bound)
        b = jax.random.uniform(kb, (fout,), jnp.float32, -bound, bound)
        if i < N_LAYERS - 1:
            # Fold eval-mode BatchNorm1d into the Linear:
            #   y = gamma * (Wx + b - mean) / sqrt(var + eps) + beta
            if bn_stats is not None:
                g, be, mu, var = (bn_stats[i][k] for k in ("gamma", "beta", "mean", "var"))
            else:
                g = jnp.ones((fout,), jnp.float32)
                be = jnp.zeros((fout,), jnp.float32)
                mu = jnp.zeros((fout,), jnp.float32)
                var = jnp.ones((fout,), jnp.float32)
            scale = g / jnp.sqrt(var + BN_EPS)
            w_eff = w * scale[None, :]
            b_eff = (b - mu) * scale + be
        else:
            w_eff, b_eff = w, b

        if i == 0:
            w0 = w0.at[:, :fout].set(w_eff)
        else:
            wr = wr.at[i - 1, :fin, :fout].set(w_eff)
        bias = bias.at[i, 0, :fout].set(b_eff)

    return w0.astype(jnp.bfloat16), wr.astype(jnp.bfloat16), bias


def model_forward(cp, ep_prev, op_prev, w0, wr, bias):
    x = jnp.concatenate([cp, ep_prev, op_prev], axis=1).astype(jnp.float32)  # (B, 76)
    B = x.shape[0]
    b_pad = ((B + TB - 1) // TB) * TB
    if b_pad != B:
        x = jnp.pad(x, ((0, b_pad - B), (0, 0)))
    out_pad = mlp_forward(x, w0, wr, bias)
    return out_pad[:B, :OUT_F]                                               # (B, 15)


def _ref_forward(x_pad, w0, wr, bias):
    """Pure-JAX reference using the same folded bf16 weights (for verification)."""
    z = jnp.dot(x_pad.astype(jnp.bfloat16), w0, preferred_element_type=jnp.float32) + bias[0]
    h = jnp.where(z > 0, z, NEG_SLOPE * z)
    for i in range(N_LAYERS - 1):
        z = jnp.dot(h[:, :HID].astype(jnp.bfloat16), wr[i],
                    preferred_element_type=jnp.float32) + bias[i + 1]
        h = jnp.where(z > 0, z, NEG_SLOPE * z) if i < N_LAYERS - 2 else z
    return h


if __name__ == "__main__":
    key = jax.random.PRNGKey(0)
    kp, k1, k2, k3 = jax.random.split(key, 4)
    w0, wr, bias = init_params(kp)

    B = 2
    cp = jax.random.normal(k1, (B, CP_DIM), jnp.float32)
    ep_prev = jax.random.normal(k2, (B, EP_DIM), jnp.float32)
    op_prev = jax.random.normal(k3, (B, OP_DIM), jnp.float32)

    out = model_forward(cp, ep_prev, op_prev, w0, wr, bias)
    jax.block_until_ready(out)
    assert out.shape == (B, OUT_F) and out.dtype == jnp.float32

    # Cross-check against a pure-JAX reference with the identical folded weights.
    x = jnp.concatenate([cp, ep_prev, op_prev], axis=1)
    x_pad = jnp.pad(x, ((0, TB - B), (0, 0)))
    ref = _ref_forward(x_pad, w0, wr, bias)[:B, :OUT_F]
    assert jnp.allclose(out, ref, atol=2e-2, rtol=2e-2), "mismatch vs reference"

    print("KERNEL_OK")
</pallas_src>

<mosaic_0001>
module attributes {stable_mosaic.version = 11 : i64} {
  func.func @mlp_kernel(%arg0: i32, %arg1: memref<8x76xf32, #tpu.memory_space<vmem>>, %arg2: memref<76x128xbf16, #tpu.memory_space<vmem>>, %arg3: memref<5x64x128xbf16, #tpu.memory_space<vmem>>, %arg4: memref<6x1x128xf32, #tpu.memory_space<vmem>>, %arg5: memref<8x128xf32, #tpu.memory_space<vmem>>) attributes {dimension_semantics = [#tpu.dimension_semantics<parallel>], iteration_bounds = array<i64: 1>, scalar_prefetch = 0 : i64, scratch_operands = 0 : i64, tpu.core_type = #tpu.core_type<tc>, window_params = [{transform_indices = @transform_0, window_bounds = array<i64: 8, 76>}, {pipeline_mode = #tpu.pipeline_mode<synchronous>, transform_indices = @transform_1, window_bounds = array<i64: 76, 128>}, {pipeline_mode = #tpu.pipeline_mode<synchronous>, transform_indices = @transform_2, window_bounds = array<i64: 5, 64, 128>}, {pipeline_mode = #tpu.pipeline_mode<synchronous>, transform_indices = @transform_3, window_bounds = array<i64: 6, 1, 128>}, {transform_indices = @transform_4, window_bounds = array<i64: 8, 128>}]} {
    %c0 = arith.constant 0 : index
    %c0_0 = arith.constant 0 : index
    %0 = vector.load %arg1[%c0, %c0_0] : memref<8x76xf32, #tpu.memory_space<vmem>>, vector<8x76xf32>
    %1 = arith.truncf %0 : vector<8x76xf32> to vector<8x76xbf16>
    %c0_1 = arith.constant 0 : index
    %c0_2 = arith.constant 0 : index
    %2 = vector.load %arg2[%c0_1, %c0_2] : memref<76x128xbf16, #tpu.memory_space<vmem>>, vector<76x128xbf16>
    %cst = arith.constant dense<0.000000e+00> : vector<8x128xf32>
    %3 = tpu.matmul %1, %2, %cst {dimension_numbers = #tpu.dot_dimension_numbers<[1], [0], [0], [1], [0, 0, 1, 1], [], []>} : vector<8x76xbf16>, vector<76x128xbf16>, vector<8x128xf32> -> vector<8x128xf32>
    %c0_3 = arith.constant 0 : index
    %c0_4 = arith.constant 0 : index
    %c0_5 = arith.constant 0 : index
    %4 = vector.load %arg4[%c0_3, %c0_4, %c0_5] : memref<6x1x128xf32, #tpu.memory_space<vmem>>, vector<1x1x128xf32>
    %5 = vector.shape_cast %4 : vector<1x1x128xf32> to vector<1x128xf32>
    %6 = vector.broadcast %5 : vector<1x128xf32> to vector<8x128xf32>
    %7 = arith.addf %3, %6 : vector<8x128xf32>
    %cst_6 = arith.constant 0.000000e+00 : f32
    %8 = vector.broadcast %cst_6 : f32 to vector<8x128xf32>
    %9 = arith.cmpf ogt, %7, %8 : vector<8x128xf32>
    %cst_7 = arith.constant 0.00999999977 : f32
    %10 = vector.broadcast %cst_7 : f32 to vector<8x128xf32>
    %11 = arith.mulf %10, %7 : vector<8x128xf32>
    %12 = arith.select %9, %7, %11 : vector<8x128xi1>, vector<8x128xf32>
    %13 = vector.extract_strided_slice %12 {offsets = [0, 0], sizes = [8, 64], strides = [1, 1]} : vector<8x128xf32> to vector<8x64xf32>
    %14 = arith.truncf %13 : vector<8x64xf32> to vector<8x64xbf16>
    %c0_8 = arith.constant 0 : index
    %c0_9 = arith.constant 0 : index
    %c0_10 = arith.constant 0 : index
    %15 = vector.load %arg3[%c0_8, %c0_9, %c0_10] : memref<5x64x128xbf16, #tpu.memory_space<vmem>>, vector<1x64x128xbf16>
    %16 = vector.shape_cast %15 : vector<1x64x128xbf16> to vector<64x128xbf16>
    %cst_11 = arith.constant dense<0.000000e+00> : vector<8x128xf32>
    %17 = tpu.matmul %14, %16, %cst_11 {dimension_numbers = #tpu.dot_dimension_numbers<[1], [0], [0], [1], [0, 0, 1, 1], [], []>} : vector<8x64xbf16>, vector<64x128xbf16>, vector<8x128xf32> -> vector<8x128xf32>
    %c1 = arith.constant 1 : index
    %c0_12 = arith.constant 0 : index
    %c0_13 = arith.constant 0 : index
    %18 = vector.load %arg4[%c1, %c0_12, %c0_13] : memref<6x1x128xf32, #tpu.memory_space<vmem>>, vector<1x1x128xf32>
    %19 = vector.shape_cast %18 : vector<1x1x128xf32> to vector<1x128xf32>
    %20 = vector.broadcast %19 : vector<1x128xf32> to vector<8x128xf32>
    %21 = arith.addf %17, %20 : vector<8x128xf32>
    %cst_14 = arith.constant 0.000000e+00 : f32
    %22 = vector.broadcast %cst_14 : f32 to vector<8x128xf32>
    %23 = arith.cmpf ogt, %21, %22 : vector<8x128xf32>
    %cst_15 = arith.constant 0.00999999977 : f32
    %24 = vector.broadcast %cst_15 : f32 to vector<8x128xf32>
    %25 = arith.mulf %24, %21 : vector<8x128xf32>
    %26 = arith.select %23, %21, %25 : vector<8x128xi1>, vector<8x128xf32>
    %27 = vector.extract_strided_slice %26 {offsets = [0, 0], sizes = [8, 64], strides = [1, 1]} : vector<8x128xf32> to vector<8x64xf32>
    %28 = arith.truncf %27 : vector<8x64xf32> to vector<8x64xbf16>
    %c1_16 = arith.constant 1 : index
    %c0_17 = arith.constant 0 : index
    %c0_18 = arith.constant 0 : index
    %29 = vector.load %arg3[%c1_16, %c0_17, %c0_18] : memref<5x64x128xbf16, #tpu.memory_space<vmem>>, vector<1x64x128xbf16>
    %30 = vector.shape_cast %29 : vector<1x64x128xbf16> to vector<64x128xbf16>
    %cst_19 = arith.constant dense<0.000000e+00> : vector<8x128xf32>
    %31 = tpu.matmul %28, %30, %cst_19 {dimension_numbers = #tpu.dot_dimension_numbers<[1], [0], [0], [1], [0, 0, 1, 1], [], []>} : vector<8x64xbf16>, vector<64x128xbf16>, vector<8x128xf32> -> vector<8x128xf32>
    %c2 = arith.constant 2 : index
    %c0_20 = arith.constant 0 : index
    %c0_21 = arith.constant 0 : index
    %32 = vector.load %arg4[%c2, %c0_20, %c0_21] : memref<6x1x128xf32, #tpu.memory_space<vmem>>, vector<1x1x128xf32>
    %33 = vector.shape_cast %32 : vector<1x1x128xf32> to vector<1x128xf32>
    %34 = vector.broadcast %33 : vector<1x128xf32> to vector<8x128xf32>
    %35 = arith.addf %31, %34 : vector<8x128xf32>
    %cst_22 = arith.constant 0.000000e+00 : f32
    %36 = vector.broadcast %cst_22 : f32 to vector<8x128xf32>
    %37 = arith.cmpf ogt, %35, %36 : vector<8x128xf32>
    %cst_23 = arith.constant 0.00999999977 : f32
    %38 = vector.broadcast %cst_23 : f32 to vector<8x128xf32>
    %39 = arith.mulf %38, %35 : vector<8x128xf32>
    %40 = arith.select %37, %35, %39 : vector<8x128xi1>, vector<8x128xf32>
    %41 = vector.extract_strided_slice %40 {offsets = [0, 0], sizes = [8, 64], strides = [1, 1]} : vector<8x128xf32> to vector<8x64xf32>
    %42 = arith.truncf %41 : vector<8x64xf32> to vector<8x64xbf16>
    %c2_24 = arith.constant 2 : index
    %c0_25 = arith.constant 0 : index
    %c0_26 = arith.constant 0 : index
    %43 = vector.load %arg3[%c2_24, %c0_25, %c0_26] : memref<5x64x128xbf16, #tpu.memory_space<vmem>>, vector<1x64x128xbf16>
    %44 = vector.shape_cast %43 : vector<1x64x128xbf16> to vector<64x128xbf16>
    %cst_27 = arith.constant dense<0.000000e+00> : vector<8x128xf32>
    %45 = tpu.matmul %42, %44, %cst_27 {dimension_numbers = #tpu.dot_dimension_numbers<[1], [0], [0], [1], [0, 0, 1, 1], [], []>} : vector<8x64xbf16>, vector<64x128xbf16>, vector<8x128xf32> -> vector<8x128xf32>
    %c3 = arith.constant 3 : index
    %c0_28 = arith.constant 0 : index
    %c0_29 = arith.constant 0 : index
    %46 = vector.load %arg4[%c3, %c0_28, %c0_29] : memref<6x1x128xf32, #tpu.memory_space<vmem>>, vector<1x1x128xf32>
    %47 = vector.shape_cast %46 : vector<1x1x128xf32> to vector<1x128xf32>
    %48 = vector.broadcast %47 : vector<1x128xf32> to vector<8x128xf32>
    %49 = arith.addf %45, %48 : vector<8x128xf32>
    %cst_30 = arith.constant 0.000000e+00 : f32
    %50 = vector.broadcast %cst_30 : f32 to vector<8x128xf32>
    %51 = arith.cmpf ogt, %49, %50 : vector<8x128xf32>
    %cst_31 = arith.constant 0.00999999977 : f32
    %52 = vector.broadcast %cst_31 : f32 to vector<8x128xf32>
    %53 = arith.mulf %52, %49 : vector<8x128xf32>
    %54 = arith.select %51, %49, %53 : vector<8x128xi1>, vector<8x128xf32>
    %55 = vector.extract_strided_slice %54 {offsets = [0, 0], sizes = [8, 64], strides = [1, 1]} : vector<8x128xf32> to vector<8x64xf32>
    %56 = arith.truncf %55 : vector<8x64xf32> to vector<8x64xbf16>
    %c3_32 = arith.constant 3 : index
    %c0_33 = arith.constant 0 : index
    %c0_34 = arith.constant 0 : index
    %57 = vector.load %arg3[%c3_32, %c0_33, %c0_34] : memref<5x64x128xbf16, #tpu.memory_space<vmem>>, vector<1x64x128xbf16>
    %58 = vector.shape_cast %57 : vector<1x64x128xbf16> to vector<64x128xbf16>
    %cst_35 = arith.constant dense<0.000000e+00> : vector<8x128xf32>
    %59 = tpu.matmul %56, %58, %cst_35 {dimension_numbers = #tpu.dot_dimension_numbers<[1], [0], [0], [1], [0, 0, 1, 1], [], []>} : vector<8x64xbf16>, vector<64x128xbf16>, vector<8x128xf32> -> vector<8x128xf32>
    %c4 = arith.constant 4 : index
    %c0_36 = arith.constant 0 : index
    %c0_37 = arith.constant 0 : index
    %60 = vector.load %arg4[%c4, %c0_36, %c0_37] : memref<6x1x128xf32, #tpu.memory_space<vmem>>, vector<1x1x128xf32>
    %61 = vector.shape_cast %60 : vector<1x1x128xf32> to vector<1x128xf32>
    %62 = vector.broadcast %61 : vector<1x128xf32> to vector<8x128xf32>
    %63 = arith.addf %59, %62 : vector<8x128xf32>
    %cst_38 = arith.constant 0.000000e+00 : f32
    %64 = vector.broadcast %cst_38 : f32 to vector<8x128xf32>
    %65 = arith.cmpf ogt, %63, %64 : vector<8x128xf32>
    %cst_39 = arith.constant 0.00999999977 : f32
    %66 = vector.broadcast %cst_39 : f32 to vector<8x128xf32>
    %67 = arith.mulf %66, %63 : vector<8x128xf32>
    %68 = arith.select %65, %63, %67 : vector<8x128xi1>, vector<8x128xf32>
    %69 = vector.extract_strided_slice %68 {offsets = [0, 0], sizes = [8, 64], strides = [1, 1]} : vector<8x128xf32> to vector<8x64xf32>
    %70 = arith.truncf %69 : vector<8x64xf32> to vector<8x64xbf16>
    %c4_40 = arith.constant 4 : index
    %c0_41 = arith.constant 0 : index
    %c0_42 = arith.constant 0 : index
    %71 = vector.load %arg3[%c4_40, %c0_41, %c0_42] : memref<5x64x128xbf16, #tpu.memory_space<vmem>>, vector<1x64x128xbf16>
    %72 = vector.shape_cast %71 : vector<1x64x128xbf16> to vector<64x128xbf16>
    %cst_43 = arith.constant dense<0.000000e+00> : vector<8x128xf32>
    %73 = tpu.matmul %70, %72, %cst_43 {dimension_numbers = #tpu.dot_dimension_numbers<[1], [0], [0], [1], [0, 0, 1, 1], [], []>} : vector<8x64xbf16>, vector<64x128xbf16>, vector<8x128xf32> -> vector<8x128xf32>
    %c5 = arith.constant 5 : index
    %c0_44 = arith.constant 0 : index
    %c0_45 = arith.constant 0 : index
    %74 = vector.load %arg4[%c5, %c0_44, %c0_45] : memref<6x1x128xf32, #tpu.memory_space<vmem>>, vector<1x1x128xf32>
    %75 = vector.shape_cast %74 : vector<1x1x128xf32> to vector<1x128xf32>
    %76 = vector.broadcast %75 : vector<1x128xf32> to vector<8x128xf32>
    %77 = arith.addf %73, %76 : vector<8x128xf32>
    %c0_46 = arith.constant 0 : index
    %c0_47 = arith.constant 0 : index
    %78 = vector.load %arg5[%c0_46, %c0_47] : memref<8x128xf32, #tpu.memory_space<vmem>>, vector<8x128xf32>
    tpu.vector_store %arg5[%c0_46, %c0_47], %77 {strides = array<i32>} : memref<8x128xf32, #tpu.memory_space<vmem>>, vector<8x128xf32>,
    return
  }
  func.func @transform_0(%arg0: i32) -> (i32, i32) {
    %c0_i32 = arith.constant 0 : i32
    %c0_i32_0 = arith.constant 0 : i32
    return %arg0, %c0_i32 : i32, i32
  }
  func.func @transform_1(%arg0: i32) -> (i32, i32) {
    %c0_i32 = arith.constant 0 : i32
    %c0_i32_0 = arith.constant 0 : i32
    %c0_i32_1 = arith.constant 0 : i32
    return %c0_i32, %c0_i32_0 : i32, i32
  }
  func.func @transform_2(%arg0: i32) -> (i32, i32, i32) {
    %c0_i32 = arith.constant 0 : i32
    %c0_i32_0 = arith.constant 0 : i32
    %c0_i32_1 = arith.constant 0 : i32
    %c0_i32_2 = arith.constant 0 : i32
    return %c0_i32, %c0_i32_0, %c0_i32_1 : i32, i32, i32
  }
  func.func @transform_3(%arg0: i32) -> (i32, i32, i32) {
    %c0_i32 = arith.constant 0 : i32
    %c0_i32_0 = arith.constant 0 : i32
    %c0_i32_1 = arith.constant 0 : i32
    %c0_i32_2 = arith.constant 0 : i32
    return %c0_i32, %c0_i32_0, %c0_i32_1 : i32, i32, i32
  }
  func.func @transform_4(%arg0: i32) -> (i32, i32) {
    %c0_i32 = arith.constant 0 : i32
    %c0_i32_0 = arith.constant 0 : i32
    return %arg0, %c0_i32 : i32, i32
  }
}

</mosaic_0001>

<bundles_post_ra>
// kernel: mlp_forward.1
= control target key start
LH: loop header
LB: loop body
LE: loop exit
PB: predicated region body
PF: predicated region fallthrough
CT: control target
= control target key end

     0   :  { %9 = vsyncpa [#allocation3], 0  ;;  %s1005_s0 = inlined_call_operand.hbm [shape: f32[8,76], index: 0, kind: input, shape index: {}]   ;;  %s1006_s1 = inlined_call_operand.hbm [shape: bf16[76,128], index: 1, kind: input, shape index: {}]   ;;  %s1007_s2 = inlined_call_operand.hbm [shape: bf16[5,64,128], index: 2, kind: input, shape index: {}]   ;;  %s1008_s3 = inlined_call_operand.hbm [shape: f32[6,1,128], index: 3, kind: input, shape index: {}]   ;;  %s1009_s4 = inlined_call_operand.hbm [shape: f32[8,128], index: 4, kind: output, shape index: {}]  }
   0x1   :  { %10 = vsyncpa [#allocation6], 0 }
   0x2   :  { %11 = vsyncpa [#allocation9], 0 }
   0x3   :  { %12 = vsyncpa [#allocation4], 0  ;;  %s912_s15 = smov [#allocation5]  }
   0x4   :  { %s28_s16 = sshll.u32 %s912_s15, 4  ;;  %s29_s16 = int_to_ptr.vmem [resolvable:$true] %s28_s16 }
   0x5   :  { %s812_s17 = scalar_lea.vmem %s29_s16, 640  ;;  %p817_p1 = scmp.lt.s32.totalorder %s29_s16, %s29_s16 }
   0x6   :  { %p813_p0 = scmp.ne.s32.totalorder %s29_s16, %s812_s17  ;;  %p818_p2 = scmp.lt.s32.totalorder %s812_s17, %s812_s17 }
   0x8   :  { %p819_p3 = por %p818_p2, %p817_p1 }
   0xa   :  { %p820_p4 = pnand %p819_p3, %p813_p0 }
   0xc   :  { %823 = shalt.err (!%p820_p4)
}
   0xd   :  { %s913_s18 = smov 64   ;;  %s914_s19 = smov 4  }
   0xe   :  { %34 = dma.hbm_to_vmem [thread:$0]  %s1006_s1, 640, %s29_s16, [#allocation6], %s913_s18, %s913_s18, %s914_s19  }
   0xf   :  { %s915_s22 = smov [#allocation2]   ;;  %s916_s24 = smov [#allocation7]  }
  0x10   :  { %s19_s23 = sshll.u32 %s915_s22, 4  ;;  %s40_s25 = sshll.u32 %s916_s24, 4  ;;  %s20_s23 = int_to_ptr.vmem [resolvable:$true] %s19_s23  ;;  %s41_s25 = int_to_ptr.vmem [resolvable:$true] %s40_s25 }
  0x11   :  { %s832_s26 = scalar_lea.vmem %s20_s23, 128  ;;  %p837_p6 = scmp.lt.s32.totalorder %s20_s23, %s20_s23 }
  0x12   :  { %p833_p5 = scmp.ne.s32.totalorder %s20_s23, %s832_s26  ;;  %p838_p7 = scmp.lt.s32.totalorder %s832_s26, %s832_s26 }
  0x14   :  { %p839_p8 = por %p838_p7, %p837_p6 }
  0x16   :  { %p840_p9 = pnand %p839_p8, %p833_p5 }
  0x18   :  { %843 = shalt.err (!%p840_p9)
}
  0x19   :  { %22 = dma.hbm_to_vmem [thread:$0]  %s1005_s0, 128, %s20_s23, [#allocation3]  }
  0x1a   :  { %s852_s29 = scalar_lea.vmem %s41_s25, 2560  ;;  %p857_p11 = scmp.lt.s32.totalorder %s41_s25, %s41_s25 }
  0x1b   :  { %p853_p10 = scmp.ne.s32.totalorder %s41_s25, %s852_s29  ;;  %p858_p12 = scmp.lt.s32.totalorder %s852_s29, %s852_s29 }
  0x1d   :  { %p859_p13 = por %p858_p12, %p857_p11 }
  0x1f   :  { %p860_p0 = pnand %p859_p13, %p853_p10 }
  0x21   :  { %863 = shalt.err (!%p860_p0)
}
  0x22   :  { %46 = dma.hbm_to_vmem [thread:$0]  %s1007_s2, 2560, %s41_s25, [#allocation6], %s913_s18, %s913_s18, %s914_s19  }
  0x23   :  { %s917_s5 = smov [#allocation8]  }
  0x24   :  { %s52_s6 = sshll.u32 %s917_s5, 4  ;;  %s53_s6 = int_to_ptr.vmem [resolvable:$true] %s52_s6 }
  0x25   :  { %s872_s7 = scalar_lea.vmem %s53_s6, 96  ;;  %p877_p2 = scmp.lt.s32.totalorder %s53_s6, %s53_s6 }
  0x26   :  { %p873_p1 = scmp.ne.s32.totalorder %s53_s6, %s872_s7  ;;  %p878_p3 = scmp.lt.s32.totalorder %s872_s7, %s872_s7 }
  0x28   :  { %p879_p4 = por %p878_p3, %p877_p2 }
  0x2a   :  { %p880_p5 = pnand %p879_p4, %p873_p1 }
  0x2c   :  { %883 = shalt.err (!%p880_p5)
}
  0x2d   :  { %s918_s0 = smov 16   ;;  %s919_s8 = smov 1  }
  0x2e   :  { %58 = dma.hbm_to_vmem [thread:$0]  %s1008_s3, 96, %s53_s6, [#allocation9], %s918_s0, %s918_s0, %s919_s8  }
  0x2f   :  { %904 = dma.done.wait [#allocation3], 128  }
  0x30   :  { %905 = vsyncadd [#allocation3], 4294967168 }
  0x31   :  { %906 = dma.done.wait [#allocation6], 3200  }
  0x32   :  { %907 = vsyncadd [#allocation6], 4294964096 }
  0x33   :  { %908 = dma.done.wait [#allocation9], 96  }
  0x34   :  { %909 = vsyncadd [#allocation9], 4294967200  ;;  %v920_v0 = vmov 0.0   ;;  %vm921_vm0 = vmmov 0   ;;  %vm124_vm1 = vcmask 1045504   ;;  %v780_v3 = vld [vmem:[#allocation5 + $0x18] sm:$0xff]  }
  0x35   :  { %694 = vmatprep.subr.bf16.mxu0 %v920_v0  ;;  %704 = vmatprep.mubr.msk.bf16.mxu0 %vm921_vm0, %v920_v0  ;;  %v779_v1 = vld [vmem:[#allocation5 + $0x20] sm:$0x3f]   ;;  %v781_v5 = vld [vmem:[#allocation5 + $0x10] sm:$0xff]   ;;  %v785_v6 = vld [vmem:[#allocation7 + $0x10] sm:$0xff]   ;;  %vm120_vm2 = vcmask 621568   ;;  %vm212_vm4 = vcmask 523264  }
  0x36   :  { %708 = vmatprep.subr.bf16.mxu1 %v920_v0  ;;  %716 = vmatprep.mubr.msk.bf16.mxu1 %vm921_vm0, %v920_v0  ;;  %v126_v2 = vsel %vm124_vm1, %v779_v1, 0  ;;  %v784_v4 = vld [vmem:[#allocation7 + $0x18] sm:$0xff]   ;;  %v782_v7 = vld [vmem:[#allocation5 + $0x8] sm:$0xff]   ;;  %v72_v9 = vld [vmem:[#allocation2] sm:$0xff]  ;;  %s922_s2 = smov [#allocation10]  }
  0x37   :  { %695 = vmatpush3.bf16.msra.mxu0 %v126_v2  ;;  %709 = vmatpush3.bf16.msra.mxu1 %v784_v4  ;;  %v783_v8 = vld [vmem:[#allocation5] sm:$0xff]   ;;  %v73_v10 = vpack.c.bf16 %v72_v9, %v72_v9  ;;  %v786_v11 = vld [vmem:[#allocation7 + $0x8] sm:$0xff]   ;;  %v787_v12 = vld [vmem:[#allocation7] sm:$0xff]   ;;  %s615_s3 = sshll.u32 %s922_s2, 4  ;;  %s616_s3 = int_to_ptr.vmem [resolvable:$true] %s615_s3 }
  0x38   :  { %696 = vmatprep.subr.bf16.mxu0 %v920_v0  ;;  %710 = vmatprep.subr.bf16.mxu1 %v920_v0  ;;  %v626_v13 = vld [vmem:[#allocation8] ss:$0 sm:$0xff]  ;;  %v788_v20 = vld [vmem:[#allocation7 + $0x38] sm:$0xff]   ;;  %v789_v23 = vld [vmem:[#allocation7 + $0x30] sm:$0xff]   ;;  %s884_s11 = scalar_lea.vmem %s616_s3, 128  ;;  %p889_p7 = scmp.lt.s32.totalorder %s616_s3, %s616_s3 }
  0x39   :  { %v790_v24 = vld [vmem:[#allocation7 + $0x28] sm:$0xff]   ;;  %v791_v25 = vld [vmem:[#allocation7 + $0x20] sm:$0xff]   ;;  %v792_v26 = vld [vmem:[#allocation7 + $0x58] sm:$0xff]   ;;  %p885_p6 = scmp.ne.s32.totalorder %s616_s3, %s884_s11  ;;  %p890_p8 = scmp.lt.s32.totalorder %s884_s11, %s884_s11 }
  0x3a   :  { %v793_v27 = vld [vmem:[#allocation7 + $0x50] sm:$0xff]   ;;  %v633_v28 = vld [vmem:[#allocation8 + $0x1] ss:$0 sm:$0xff]  ;;  %v794_v37 = vld [vmem:[#allocation7 + $0x48] sm:$0xff]  }
  0x3b   :  { %697 = vmatpush3.bf16.msra.mxu0 %v780_v3  ;;  %711 = vmatpush3.bf16.msra.mxu1 %v785_v6  ;;  %v795_v38 = vld [vmem:[#allocation7 + $0x40] sm:$0xff]   ;;  %v796_v39 = vld [vmem:[#allocation7 + $0x78] sm:$0xff]   ;;  %v797_v40 = vld [vmem:[#allocation7 + $0x70] sm:$0xff]   ;;  %p891_p9 = por %p890_p8, %p889_p7 }
  0x3c   :  { %698 = vmatprep.subr.bf16.mxu0 %v920_v0  ;;  %712 = vmatprep.subr.bf16.mxu1 %v920_v0  ;;  %v639_v41 = vld [vmem:[#allocation8 + $0x2] ss:$0 sm:$0xff]  ;;  %v798_v50 = vld [vmem:[#allocation7 + $0x68] sm:$0xff]   ;;  %v800_v52 = vld [vmem:[#allocation7 + $0x98] sm:$0xff]  }
  0x3d   :  { %v799_v51 = vld [vmem:[#allocation7 + $0x60] sm:$0xff]   ;;  %v801_v53 = vld [vmem:[#allocation7 + $0x90] sm:$0xff]   ;;  %v802_v63 = vld [vmem:[#allocation7 + $0x88] sm:$0xff]   ;;  %p892_p10 = pnand %p891_p9, %p885_p6 }
  0x3e   :  { %v645_v54 = vld [vmem:[#allocation8 + $0x3] ss:$0 sm:$0xff]  ;;  %v651_v2 = vld [vmem:[#allocation8 + $0x4] ss:$0 sm:$0xff] }
  0x3f   :  { %699 = vmatpush3.bf16.msra.mxu0 %v781_v5  ;;  %713 = vmatpush3.bf16.msra.mxu1 %v786_v11  ;;  %v803_v1 = vld [vmem:[#allocation7 + $0x80] sm:$0xff]  }
  0x40   :  { %700 = vmatprep.subr.bf16.mxu0 %v920_v0  ;;  %714 = vmatprep.subr.bf16.mxu1 %v920_v0  ;;  %v657_v11 = vld [vmem:[#allocation8 + $0x5] ss:$0 sm:$0xff] }
  0x43   :  { %701 = vmatpush3.bf16.msra.mxu0 %v782_v7  ;;  %715 = vmatpush3.bf16.msra.mxu1 %v787_v12 }
  0x44   :  { %702 = vmatprep.subr.bf16.mxu0 %v920_v0  ;;  %720 = vmatprep.subr.bf16.mxu1 %v920_v0 }
  0x47   :  { %703 = vmatpush3.bf16.msra.mxu0 %v783_v8 }
  0x48   :  { %732 = vmatprep.subr.bf16.mxu0 %v920_v0 }
  0x4a   :  { %705 = vmatmul.mubr.msk.bf16.vlgmr.msra.gmra.mxu0 %vm120_vm2, %v73_v10 }
  0x4b   :  { %740 = vmatprep.mubr.msk.bf16.mxu0 %vm921_vm0, %v920_v0  ;;  %733 = vmatpush3.bf16.msra.mxu0 %v792_v26 }
  0x4c   :  { %734 = vmatprep.subr.bf16.mxu0 %v920_v0 }
  0x4f   :  { %735 = vmatpush3.bf16.msra.mxu0 %v793_v27 }
  0x50   :  { %736 = vmatprep.subr.bf16.mxu0 %v920_v0 }
  0x53   :  { %737 = vmatpush3.bf16.msra.mxu0 %v794_v37 }
  0x54   :  { %738 = vmatprep.subr.bf16.mxu0 %v920_v0 }
  0x57   :  { %739 = vmatpush3.bf16.msra.mxu0 %v795_v38 }
  0x58   :  { %756 = vmatprep.subr.bf16.mxu0 %v920_v0 }
 0x10a   :  { %v162_v14 = vpop.f32.mrf.mxu0 }
 0x10b   :  { %v163_v15 = vadd.f32 %v626_v13, %v162_v14 }
 0x10c   :  { %v706_v16 = vpop.f32.mrf.mxu0 }
 0x10d   :  { %vm168_vm3 = vcmp.gt.f32.partialorder %v163_v15, 0.0  ;;  %v169_v17 = vmul.f32 0.01, %v163_v15 }
 0x10e   :  { %v165_v18 = vpop.f32.mrf.mxu0 }
 0x10f   :  { %v170_v19 = vsel %vm168_vm3, %v163_v15, %v169_v17 }
 0x110   :  { %v171_v21 = vpack.c.bf16 %v170_v19, %v170_v19  ;;  %v707_v22 = vpop.f32.mrf.mxu0 }
 0x112   :  { %717 = vmatmul.mubr.msk.bf16.vlgmr.msra.gmra.mxu1 %vm212_vm4, %v171_v21 }
 0x113   :  { %721 = vmatpush3.bf16.msra.mxu1 %v788_v20  ;;  %728 = vmatprep.mubr.msk.bf16.mxu1 %vm921_vm0, %v920_v0 }
 0x114   :  { %722 = vmatprep.subr.bf16.mxu1 %v920_v0 }
 0x117   :  { %723 = vmatpush3.bf16.msra.mxu1 %v789_v23 }
 0x118   :  { %724 = vmatprep.subr.bf16.mxu1 %v920_v0 }
 0x11b   :  { %725 = vmatpush3.bf16.msra.mxu1 %v790_v24 }
 0x11c   :  { %726 = vmatprep.subr.bf16.mxu1 %v920_v0 }
 0x11f   :  { %727 = vmatpush3.bf16.msra.mxu1 %v791_v25 }
 0x120   :  { %744 = vmatprep.subr.bf16.mxu1 %v920_v0 }
 0x1d2   :  { %v250_v29 = vpop.f32.mrf.mxu1 }
 0x1d3   :  { %v251_v30 = vadd.f32 %v633_v28, %v250_v29 }
 0x1d4   :  { %v718_v31 = vpop.f32.mrf.mxu1 }
 0x1d5   :  { %vm256_vm5 = vcmp.gt.f32.partialorder %v251_v30, 0.0  ;;  %v257_v32 = vmul.f32 0.01, %v251_v30 }
 0x1d6   :  { %v253_v33 = vpop.f32.mrf.mxu1 }
 0x1d7   :  { %v258_v34 = vsel %vm256_vm5, %v251_v30, %v257_v32 }
 0x1d8   :  { %v259_v35 = vpack.c.bf16 %v258_v34, %v258_v34  ;;  %v719_v36 = vpop.f32.mrf.mxu1 }
 0x1da   :  { %729 = vmatmul.mubr.msk.bf16.vlgmr.msra.gmra.mxu1 %vm212_vm4, %v259_v35 }
 0x1db   :  { %752 = vmatprep.mubr.msk.bf16.mxu1 %vm921_vm0, %v920_v0  ;;  %745 = vmatpush3.bf16.msra.mxu1 %v796_v39 }
 0x1dc   :  { %746 = vmatprep.subr.bf16.mxu1 %v920_v0 }
 0x1df   :  { %747 = vmatpush3.bf16.msra.mxu1 %v797_v40 }
 0x1e0   :  { %748 = vmatprep.subr.bf16.mxu1 %v920_v0 }
 0x1e3   :  { %749 = vmatpush3.bf16.msra.mxu1 %v798_v50 }
 0x1e4   :  { %750 = vmatprep.subr.bf16.mxu1 %v920_v0 }
 0x1e7   :  { %751 = vmatpush3.bf16.msra.mxu1 %v799_v51 }
 0x29a   :  { %v338_v42 = vpop.f32.mrf.mxu1 }
 0x29b   :  { %v339_v43 = vadd.f32 %v639_v41, %v338_v42 }
 0x29c   :  { %v730_v44 = vpop.f32.mrf.mxu1 }
 0x29d   :  { %vm344_vm6 = vcmp.gt.f32.partialorder %v339_v43, 0.0  ;;  %v345_v45 = vmul.f32 0.01, %v339_v43 }
 0x29e   :  { %v341_v46 = vpop.f32.mrf.mxu1 }
 0x29f   :  { %v346_v47 = vsel %vm344_vm6, %v339_v43, %v345_v45 }
 0x2a0   :  { %v347_v48 = vpack.c.bf16 %v346_v47, %v346_v47  ;;  %v731_v49 = vpop.f32.mrf.mxu1 }
 0x2a2   :  { %741 = vmatmul.mubr.msk.bf16.vlgmr.msra.gmra.mxu0 %vm212_vm4, %v347_v48 }
 0x2a3   :  { %764 = vmatprep.mubr.msk.bf16.mxu0 %vm921_vm0, %v920_v0  ;;  %757 = vmatpush3.bf16.msra.mxu0 %v800_v52 }
 0x2a4   :  { %758 = vmatprep.subr.bf16.mxu0 %v920_v0 }
 0x2a7   :  { %759 = vmatpush3.bf16.msra.mxu0 %v801_v53 }
 0x2a8   :  { %760 = vmatprep.subr.bf16.mxu0 %v920_v0 }
 0x2ab   :  { %761 = vmatpush3.bf16.msra.mxu0 %v802_v63 }
 0x2ac   :  { %762 = vmatprep.subr.bf16.mxu0 %v920_v0 }
 0x2af   :  { %763 = vmatpush3.bf16.msra.mxu0 %v803_v1 }
 0x362   :  { %v426_v55 = vpop.f32.mrf.mxu0 }
 0x363   :  { %v427_v56 = vadd.f32 %v645_v54, %v426_v55 }
 0x364   :  { %v742_v57 = vpop.f32.mrf.mxu0 }
 0x365   :  { %vm432_vm7 = vcmp.gt.f32.partialorder %v427_v56, 0.0  ;;  %v433_v58 = vmul.f32 0.01, %v427_v56 }
 0x366   :  { %v429_v59 = vpop.f32.mrf.mxu0 }
 0x367   :  { %v434_v60 = vsel %vm432_vm7, %v427_v56, %v433_v58 }
 0x368   :  { %v435_v61 = vpack.c.bf16 %v434_v60, %v434_v60  ;;  %v743_v62 = vpop.f32.mrf.mxu0 }
 0x36a   :  { %753 = vmatmul.mubr.msk.bf16.vlgmr.msra.gmra.mxu1 %vm212_vm4, %v435_v61 }
 0x42a   :  { %v514_v3 = vpop.f32.mrf.mxu1 }
 0x42b   :  { %v515_v4 = vadd.f32 %v651_v2, %v514_v3 }
 0x42c   :  { %v754_v5 = vpop.f32.mrf.mxu1 }
 0x42d   :  { %vm520_vm8 = vcmp.gt.f32.partialorder %v515_v4, 0.0  ;;  %v521_v6 = vmul.f32 0.01, %v515_v4 }
 0x42e   :  { %v517_v7 = vpop.f32.mrf.mxu1 }
 0x42f   :  { %v522_v8 = vsel %vm520_vm8, %v515_v4, %v521_v6 }
 0x430   :  { %v523_v9 = vpack.c.bf16 %v522_v8, %v522_v8  ;;  %v755_v10 = vpop.f32.mrf.mxu1 }
 0x432   :  { %765 = vmatmul.mubr.msk.bf16.vlgmr.msra.gmra.mxu0 %vm212_vm4, %v523_v9 }
 0x4f2   :  { %v602_v12 = vpop.f32.mrf.mxu0 }
 0x4f3   :  { %v603_v13 = vadd.f32 %v657_v11, %v602_v12 }
 0x4f4   :  { %v766_v0 = vpop.f32.mrf.mxu0 }
 0x4f5   :  { %608 = vst [vmem:[#allocation10] sm:$0xff] %v603_v13 }
 0x4f6   :  { %v605_v14 = vpop.f32.mrf.mxu0 }
 0x4f7   :  { %895 = shalt.err (!%p892_p10)
}
 0x4f8   :  { %618 = dma.vmem_to_hbm [thread:$0]  %s616_s3, 128, %s1009_s4, [#allocation4]   ;;  %v767_v15 = vpop.f32.mrf.mxu0 }
 0x4f9   :  { %910 = dma.done.wait [#allocation4], 128  }
 0x4fa   :  { %911 = vsyncadd [#allocation4], 4294967168 }
 0x4fb   :  { %622 = vsyncpa [#allocation3], 1 }
 0x4fc   :  { %623 = vsyncpa [#allocation6], 1 }
 0x4fd   :  { %624 = vsyncpa [#allocation9], 1 }
 0x4fe   :  { %625 = vsyncpa [#allocation4], 1 }

</bundles_post_ra>
